<compile_context>
chip_gen: v5e
topology: v5e:2x2
jax: 0.10.0
libtpu: 0.0.40
codegen_flags: <defaults>
</compile_context>

<pallas_src>
import jax
import jax.numpy as jnp
from jax.experimental import pallas as pl
from jax.experimental.pallas import tpu as pltpu


def _round_up(x, m):
    return ((x + m - 1) // m) * m


def mlp_kernel(x_ref, w1_ref, w2_ref, w3_ref, o_ref):
    """Fused 3-layer bias-free MLP: tanh(tanh(tanh(x@W1)@W2)@W3).

    Matmuls run on the MXU in the weights' dtype (f32 or bf16) with f32
    accumulation; tanh is evaluated in f32 (EUP). The x -> compute-dtype cast
    happens here (in vregs), never in the wrapper. Intermediates h1/h2 live
    only in vregs/VMEM.
    """
    cdt = w1_ref.dtype
    x = x_ref[...].astype(cdt)
    h1 = jnp.tanh(jnp.dot(x, w1_ref[...], preferred_element_type=jnp.float32))
    h2 = jnp.tanh(jnp.dot(h1.astype(cdt), w2_ref[...],
                          preferred_element_type=jnp.float32))
    out = jnp.tanh(jnp.dot(h2.astype(cdt), w3_ref[...],
                           preferred_element_type=jnp.float32))
    o_ref[...] = out.astype(o_ref.dtype)


def net_forward(x, w1, w2, w3, *, block_b=1024, compute_dtype=None):
    """Forward pass of `Net`.

    x  : [B, n_feature] float32
    w* : PyTorch-layout [out, in] weights (hidden1 / hidden2 / out)
    Returns float32 [B, n_output] = tanh(tanh(tanh(x@w1.T)@w2.T)@w3.T).

    compute_dtype: dtype of the matmul operands (default: x.dtype, i.e. f32).
    jnp.bfloat16 is a v6e/v7x knob (MXU fast path); keep f32 on v5e.
    """
    if compute_dtype is None:
        compute_dtype = x.dtype
    compute_dtype = jnp.dtype(compute_dtype)

    B, F = x.shape
    H1, H2, O = w1.shape[0], w2.shape[0], w3.shape[0]

    # Batch tile: multiple of the f32 sublane packing (8). Cap it so the
    # "parallel" grid has >= 2 roughly balanced blocks when B allows (v7x has
    # 2 TensorCores; a 1-block grid leaves one idle). No batch padding:
    # the last block may be ragged.
    sub = 8
    tb = min(
        _round_up(block_b, sub),          # requested tile
        _round_up(pl.cdiv(B, 2), sub),    # >= 2 balanced blocks on v7x
        _round_up(B, sub),                # never exceed (rounded) batch
    )
    tb = max(tb, sub)
    n_blocks = pl.cdiv(B, tb)

    # Weight prep: transpose to [in, out] so the kernel does plain x @ W.
    # Tiny (<= 64 KiB each); in a production path hoist this out of the
    # per-call path / close over prepared weights.
    w1_t = w1.T.astype(compute_dtype)
    w2_t = w2.T.astype(compute_dtype)
    w3_t = w3.T.astype(compute_dtype)

    return pl.pallas_call(
        mlp_kernel,
        out_shape=jax.ShapeDtypeStruct((B, O), jnp.float32),
        grid=(n_blocks,),
        in_specs=[
            # Batch-tiled activations, streamed directly from HBM (no pad /
            # cast pass). F == full array dim -> (8,128) rule satisfied.
            pl.BlockSpec((tb, F), lambda i: (i, 0)),
            # Weights: constant block index -> stay VMEM-resident across grid.
            pl.BlockSpec((F, H1), lambda i: (0, 0)),
            pl.BlockSpec((H1, H2), lambda i: (0, 0)),
            pl.BlockSpec((H2, O), lambda i: (0, 0)),
        ],
        # Real-width output: no 128-lane padding slab, no wrapper slice pass.
        out_specs=pl.BlockSpec((tb, O), lambda i: (i, 0)),
        compiler_params=pltpu.CompilerParams(
            # Batch grid axis is independent -> shard across v7x's 2 TCs.
            dimension_semantics=("parallel",),
        ),
    )(x, w1_t, w2_t, w3_t)


if __name__ == "__main__":
    # Module hyperparameters (small, consistent with the MLP forward).
    n_feature, n_hidden1, n_hidden2, n_output = 32, 64, 32, 16
    batch = 8

    key = jax.random.PRNGKey(0)
    kx, k1, k2, k3, kxl = jax.random.split(key, 5)

    # Deterministic weight init, PyTorch layout [out, in]
    # (nn.Linear default init is uniform(-1/sqrt(in), 1/sqrt(in))).
    def init_w(k, out_f, in_f):
        bound = 1.0 / jnp.sqrt(jnp.float32(in_f))
        return jax.random.uniform(
            k, (out_f, in_f), dtype=jnp.float32, minval=-bound, maxval=bound
        )

    w1 = init_w(k1, n_hidden1, n_feature)   # hidden1.weight  [h1, f]
    w2 = init_w(k2, n_hidden2, n_hidden1)   # hidden2.weight  [h2, h1]
    w3 = init_w(k3, n_output, n_hidden2)    # out.weight      [o, h2]

    def ref_forward(xx):  # plain JAX reference (same math as PyTorch forward)
        return jnp.tanh(jnp.tanh(jnp.tanh(xx @ w1.T) @ w2.T) @ w3.T)

    # 1) Tiny (module-sized) batch, f32 compute, single grid block.
    x = jax.random.normal(kx, (batch, n_feature), dtype=jnp.float32)
    y = jax.block_until_ready(net_forward(x, w1, w2, w3))
    assert y.shape == (batch, n_output)
    assert jnp.allclose(y, ref_forward(x), atol=1e-5, rtol=1e-5)

    # 2) Larger, non-multiple batch exercising multi-block "parallel" grid
    #    with a ragged last block (no batch padding anywhere).
    xl = jax.random.normal(kxl, (1000, n_feature), dtype=jnp.float32)
    yl = jax.block_until_ready(net_forward(xl, w1, w2, w3, block_b=256))
    assert yl.shape == (1000, n_output)
    assert jnp.allclose(yl, ref_forward(xl), atol=1e-5, rtol=1e-5)

    # 3) Default (large) tile + bf16 matmul operands (v6e/v7x knob);
    #    x is cast inside the kernel, tanh + accumulation stay f32.
    yb = jax.block_until_ready(
        net_forward(xl, w1, w2, w3, compute_dtype=jnp.bfloat16)
    )
    assert yb.shape == (1000, n_output)
    assert jnp.allclose(yb, ref_forward(xl), atol=5e-2, rtol=5e-2)

    print("KERNEL_OK")
</pallas_src>

<mosaic_0001>
module attributes {stable_mosaic.version = 11 : i64} {
  func.func @mlp_kernel(%arg0: i32, %arg1: memref<8x32xf32, #tpu.memory_space<vmem>>, %arg2: memref<32x64xf32, #tpu.memory_space<vmem>>, %arg3: memref<64x32xf32, #tpu.memory_space<vmem>>, %arg4: memref<32x16xf32, #tpu.memory_space<vmem>>, %arg5: memref<8x16xf32, #tpu.memory_space<vmem>>) attributes {dimension_semantics = [#tpu.dimension_semantics<parallel>], iteration_bounds = array<i64: 1>, scalar_prefetch = 0 : i64, scratch_operands = 0 : i64, tpu.core_type = #tpu.core_type<tc>, window_params = [{transform_indices = @transform_0, window_bounds = array<i64: 8, 32>}, {pipeline_mode = #tpu.pipeline_mode<synchronous>, transform_indices = @transform_1, window_bounds = array<i64: 32, 64>}, {pipeline_mode = #tpu.pipeline_mode<synchronous>, transform_indices = @transform_2, window_bounds = array<i64: 64, 32>}, {pipeline_mode = #tpu.pipeline_mode<synchronous>, transform_indices = @transform_3, window_bounds = array<i64: 32, 16>}, {transform_indices = @transform_4, window_bounds = array<i64: 8, 16>}]} {
    %c0 = arith.constant 0 : index
    %c0_0 = arith.constant 0 : index
    %0 = vector.load %arg1[%c0, %c0_0] : memref<8x32xf32, #tpu.memory_space<vmem>>, vector<8x32xf32>
    %c0_1 = arith.constant 0 : index
    %c0_2 = arith.constant 0 : index
    %1 = vector.load %arg2[%c0_1, %c0_2] : memref<32x64xf32, #tpu.memory_space<vmem>>, vector<32x64xf32>
    %cst = arith.constant dense<0.000000e+00> : vector<8x64xf32>
    %2 = tpu.matmul %0, %1, %cst {dimension_numbers = #tpu.dot_dimension_numbers<[1], [0], [0], [1], [0, 0, 1, 1], [], []>} : vector<8x32xf32>, vector<32x64xf32>, vector<8x64xf32> -> vector<8x64xf32>
    %3 = math.tanh %2 : vector<8x64xf32>
    %c0_3 = arith.constant 0 : index
    %c0_4 = arith.constant 0 : index
    %4 = vector.load %arg3[%c0_3, %c0_4] : memref<64x32xf32, #tpu.memory_space<vmem>>, vector<64x32xf32>
    %cst_5 = arith.constant dense<0.000000e+00> : vector<8x32xf32>
    %5 = tpu.matmul %3, %4, %cst_5 {dimension_numbers = #tpu.dot_dimension_numbers<[1], [0], [0], [1], [0, 0, 1, 1], [], []>} : vector<8x64xf32>, vector<64x32xf32>, vector<8x32xf32> -> vector<8x32xf32>
    %6 = math.tanh %5 : vector<8x32xf32>
    %c0_6 = arith.constant 0 : index
    %c0_7 = arith.constant 0 : index
    %7 = vector.load %arg4[%c0_6, %c0_7] : memref<32x16xf32, #tpu.memory_space<vmem>>, vector<32x16xf32>
    %cst_8 = arith.constant dense<0.000000e+00> : vector<8x16xf32>
    %8 = tpu.matmul %6, %7, %cst_8 {dimension_numbers = #tpu.dot_dimension_numbers<[1], [0], [0], [1], [0, 0, 1, 1], [], []>} : vector<8x32xf32>, vector<32x16xf32>, vector<8x16xf32> -> vector<8x16xf32>
    %9 = math.tanh %8 : vector<8x16xf32>
    %c0_9 = arith.constant 0 : index
    %c0_10 = arith.constant 0 : index
    %10 = vector.load %arg5[%c0_9, %c0_10] : memref<8x16xf32, #tpu.memory_space<vmem>>, vector<8x16xf32>
    tpu.vector_store %arg5[%c0_9, %c0_10], %9 {strides = array<i32>} : memref<8x16xf32, #tpu.memory_space<vmem>>, vector<8x16xf32>,
    return
  }
  func.func @transform_0(%arg0: i32) -> (i32, i32) {
    %c0_i32 = arith.constant 0 : i32
    %c0_i32_0 = arith.constant 0 : i32
    return %arg0, %c0_i32 : i32, i32
  }
  func.func @transform_1(%arg0: i32) -> (i32, i32) {
    %c0_i32 = arith.constant 0 : i32
    %c0_i32_0 = arith.constant 0 : i32
    %c0_i32_1 = arith.constant 0 : i32
    return %c0_i32, %c0_i32_0 : i32, i32
  }
  func.func @transform_2(%arg0: i32) -> (i32, i32) {
    %c0_i32 = arith.constant 0 : i32
    %c0_i32_0 = arith.constant 0 : i32
    %c0_i32_1 = arith.constant 0 : i32
    return %c0_i32, %c0_i32_0 : i32, i32
  }
  func.func @transform_3(%arg0: i32) -> (i32, i32) {
    %c0_i32 = arith.constant 0 : i32
    %c0_i32_0 = arith.constant 0 : i32
    %c0_i32_1 = arith.constant 0 : i32
    return %c0_i32, %c0_i32_0 : i32, i32
  }
  func.func @transform_4(%arg0: i32) -> (i32, i32) {
    %c0_i32 = arith.constant 0 : i32
    %c0_i32_0 = arith.constant 0 : i32
    return %arg0, %c0_i32 : i32, i32
  }
}

</mosaic_0001>

<bundles_post_ra>
// kernel: tpu_custom_call.1
= control target key start
LH: loop header
LB: loop body
LE: loop exit
PB: predicated region body
PF: predicated region fallthrough
CT: control target
= control target key end

     0   :  { %s245_s0 = inlined_call_operand.vmem [shape: f32[8,32], index: 0, kind: input, shape index: {}]   ;;  %s246_s1 = inlined_call_operand.vmem [shape: f32[32,64], index: 1, kind: input, shape index: {}]   ;;  %s247_s2 = inlined_call_operand.vmem [shape: f32[64,32], index: 2, kind: input, shape index: {}]   ;;  %s248_s3 = inlined_call_operand.vmem [shape: f32[32,16], index: 3, kind: input, shape index: {}]   ;;  %s249_s4 = inlined_call_operand.hbm [shape: f32[8,16], index: 4, kind: output, shape index: {}]  }
   0x1   :  { %v22_v0 = vld [vmem:[%s246_s1 + $0x18] sm:$0xff]  ;;  %v21_v1 = vld [vmem:[%s246_s1 + $0x10] sm:$0xff]  ;;  %v20_v3 = vld [vmem:[%s246_s1 + $0x8] sm:$0xff] }
   0x2   :  { %39 = vmatpush.msra.mxu0 %v22_v0  ;;  %v55_v2 = vld [vmem:[%s247_s2 + $0x38] sm:$0xff]  ;;  %v54_v4 = vld [vmem:[%s247_s2 + $0x30] sm:$0xff]  ;;  %v53_v5 = vld [vmem:[%s247_s2 + $0x28] sm:$0xff] }
   0x3   :  { %68 = vmatpush.msra.mxu1 %v55_v2 }
   0x4   :  { %40 = vmatpush.msra.mxu0 %v21_v1 }
   0x5   :  { %9 = vsyncpa [#allocation3], 0  ;;  %v19_v6 = vld [vmem:[%s246_s1] sm:$0xff]  ;;  %69 = vmatpush.msra.mxu1 %v54_v4  ;;  %vm23_vm0 = vcmask 261120   ;;  %v51_v9 = vld [vmem:[%s247_s2 + $0x18] sm:$0xff]  ;;  %vm56_vm1 = vcmask 523264  }
   0x6   :  { %41 = vmatpush.msra.mxu0 %v20_v3  ;;  %v18_v7 = vld [vmem:[%s245_s0] sm:$0xff]  ;;  %v50_v10 = vld [vmem:[%s247_s2 + $0x10] sm:$0xff]  ;;  %v49_v11 = vld [vmem:[%s247_s2 + $0x8] sm:$0xff]  ;;  %s163_s20 = smov [#allocation2]   ;;  %s118_s24 = sshll.u32 %s249_s4, 4  ;;  %vm109_vm2 = vcmask 130048   ;;  %s119_s24 = int_to_ptr.hbm [resolvable:$true] %s118_s24 }
   0x7   :  { %v52_v8 = vld [vmem:[%s247_s2 + $0x20] sm:$0xff]  ;;  %70 = vmatpush.msra.mxu1 %v53_v5  ;;  %v84_v15 = vld [vmem:[%s248_s3 + $0x18] sm:$0xff]  ;;  %v83_v16 = vld [vmem:[%s248_s3 + $0x10] sm:$0xff]  ;;  %s116_s21 = sshll.u32 %s163_s20, 4  ;;  %s117_s21 = int_to_ptr.vmem [resolvable:$true] %s116_s21 }
   0x8   :  { %42 = vmatpush.msra.mxu0 %v19_v6  ;;  %v48_v12 = vld [vmem:[%s247_s2] sm:$0xff]  ;;  %100 = vmatpush.msra.mxu2 %v84_v15  ;;  %v82_v17 = vld [vmem:[%s248_s3 + $0x8] sm:$0xff] }
   0x9   :  { %127 = vmatmul.msk.f32.vlgmr.msra.gmra.mxu0 %vm23_vm0, %v18_v7  ;;  %71 = vmatpush.msra.mxu1 %v52_v8  ;;  %v81_v18 = vld [vmem:[%s248_s3] sm:$0xff] }
   0xa   :  { %101 = vmatpush.msra.mxu2 %v83_v16 }
   0xb   :  { %72 = vmatpush.msra.mxu1 %v51_v9 }
   0xc   :  { %102 = vmatpush.msra.mxu2 %v82_v17 }
   0xd   :  { %73 = vmatpush.msra.mxu1 %v50_v10 }
   0xe   :  { %103 = vmatpush.msra.mxu2 %v81_v18 }
   0xf   :  { %74 = vmatpush.msra.mxu1 %v49_v11 }
  0x11   :  { %75 = vmatpush.msra.mxu1 %v48_v12 }
  0x86   :  { %v44_v13 = vpop.f32.mrf.mxu0 }
  0x87   :  { %131 = vtanh.f32 %v44_v13 }
  0x8d   :  { %v132_v14 = vpop.eup %131 }
  0x8e   :  { %128 = vmatmul.msk.f32.vlgmr.msra.gmra.mxu1 %vm56_vm1, %v132_v14 }
 0x10b   :  { %v77_v19 = vpop.f32.mrf.mxu1 }
 0x10c   :  { %133 = vtanh.f32 %v77_v19 }
 0x112   :  { %v134_v20 = vpop.eup %133 }
 0x113   :  { %129 = vmatmul.msk.f32.vlgmr.msra.gmra.mxu2 %vm23_vm0, %v134_v20 }
 0x196   :  { %v105_v21 = vpop.f32.mrf.mxu2 }
 0x197   :  { %135 = vtanh.f32 %v105_v21 }
 0x19d   :  { %v136_v22 = vpop.eup %135 }
 0x19e   :  { %110 = vst.msk [vmem:[#allocation2] sm:$0xff] %vm109_vm2, %v136_v22 }
 0x19f   :  { %121 = dma.vmem_to_hbm [thread:$0]  %s117_s21, 128, %s119_s24, [#allocation3]  }
 0x1a0   :  { %161 = dma.done.wait [#allocation3], 128  }
 0x1a1   :  { %162 = vsyncadd [#allocation3], 4294967168 }
 0x1a2   :  { %126 = vsyncpa [#allocation3], 1 }

</bundles_post_ra>
